<compile_context>
chip_gen: v6e
topology: v6e:2x2x1
jax: 0.10.0
libtpu: 0.0.40
codegen_flags: <defaults>
</compile_context>

<pallas_src>
import functools

import jax
import jax.numpy as jnp
from jax.experimental import pallas as pl
from jax.experimental.pallas import tpu as pltpu


HIDDEN = 256   # matches nn.Linear(input_dim, 256)
LANE = 128
SUBLANE = 8
VMEM_BUDGET = 48 * 1024 * 1024   # leave headroom under v7x's 64 MiB physical VMEM


def _round_up(x, m):
    return (x + m - 1) // m * m


def _mlp_kernel(x_ref, w1_ref, b1_ref, w2_ref, b2_ref, o_ref):
    # Fused Linear -> ReLU -> Linear. Both matmuls on the MXU with f32
    # accumulation; bias add / ReLU in f32 on the VPU.
    h = jnp.dot(x_ref[...], w1_ref[...], preferred_element_type=jnp.float32)
    h = jnp.maximum(h + b1_ref[...], 0.0)
    y = jnp.dot(h, w2_ref[...], preferred_element_type=jnp.float32) + b2_ref[...]
    o_ref[...] = y.astype(o_ref.dtype)


def _pick_batch_tile(B, d_in_p, d_hidden, d_out_p, itemsize, max_tile=512):
    """Largest batch tile (multiple of 8, <= max_tile) whose double-buffered
    x/out tiles + resident weights + f32 hidden fit the VMEM budget."""
    weights_bytes = (d_in_p * d_hidden + d_hidden * d_out_p
                     + d_hidden + d_out_p) * 4  # stored f32 here
    tb = min(max_tile, _round_up(B, SUBLANE))
    tb = _round_up(tb, SUBLANE)
    while tb > SUBLANE:
        per_tile = (2 * tb * (d_in_p + d_out_p) * itemsize   # double-buffered x/out
                    + tb * d_hidden * 4)                      # f32 hidden activation
        if weights_bytes + per_tile <= VMEM_BUDGET:
            break
        tb -= SUBLANE
    return max(tb, SUBLANE)


@functools.partial(jax.jit, static_argnames=("batch_tile",))
def generic_vector_generator(client_info, w1, b1, w2, b2, *, batch_tile=512):
    """Pallas implementation of GenericVectorGenerator.forward.

    client_info: (B, input_dim)
    w1: (input_dim, 256), b1: (256,) or (1, 256)
    w2: (256, output_dim), b2: (output_dim,) or (1, output_dim)
    returns: (B, output_dim) in client_info.dtype (accumulation is f32).
    """
    B, d_in = client_info.shape
    d_hidden = w1.shape[1]
    d_out = w2.shape[1]

    b1 = b1.reshape(1, d_hidden)
    b2 = b2.reshape(1, d_out)

    # Lane-dense padding of the contraction (d_in) and output (d_out) dims.
    d_in_p = _round_up(d_in, LANE)
    d_out_p = _round_up(d_out, LANE)

    itemsize = jnp.dtype(client_info.dtype).itemsize
    tb = _pick_batch_tile(B, d_in_p, d_hidden, d_out_p, itemsize, max_tile=batch_tile)
    B_p = _round_up(B, tb)

    x_p = client_info
    if (B_p, d_in_p) != (B, d_in):
        x_p = jnp.pad(client_info, ((0, B_p - B), (0, d_in_p - d_in)))
    w1_p = jnp.pad(w1, ((0, d_in_p - d_in), (0, 0))) if d_in_p != d_in else w1
    w2_p = jnp.pad(w2, ((0, 0), (0, d_out_p - d_out))) if d_out_p != d_out else w2
    b2_p = jnp.pad(b2, ((0, 0), (0, d_out_p - d_out))) if d_out_p != d_out else b2

    grid = (B_p // tb,)

    cost = pl.CostEstimate(
        flops=2 * B_p * d_hidden * (d_in_p + d_out_p),
        transcendentals=0,
        bytes_accessed=(x_p.size * x_p.dtype.itemsize
                        + w1_p.size * w1_p.dtype.itemsize
                        + b1.size * b1.dtype.itemsize
                        + w2_p.size * w2_p.dtype.itemsize
                        + b2_p.size * b2_p.dtype.itemsize
                        + B_p * d_out_p * itemsize),
    )

    out_p = pl.pallas_call(
        _mlp_kernel,
        out_shape=jax.ShapeDtypeStruct((B_p, d_out_p), client_info.dtype),
        grid_spec=pltpu.PrefetchScalarGridSpec(
            num_scalar_prefetch=0,
            grid=grid,
            in_specs=[
                # x: batch-tiled (double-buffered pipeline over batch tiles).
                pl.BlockSpec((tb, d_in_p), lambda i: (i, 0)),
                # Weights / biases: constant block index -> fetched once, VMEM-resident.
                pl.BlockSpec((d_in_p, d_hidden), lambda i: (0, 0)),
                pl.BlockSpec((1, d_hidden), lambda i: (0, 0)),
                pl.BlockSpec((d_hidden, d_out_p), lambda i: (0, 0)),
                pl.BlockSpec((1, d_out_p), lambda i: (0, 0)),
            ],
            out_specs=pl.BlockSpec((tb, d_out_p), lambda i: (i, 0)),
        ),
        compiler_params=pltpu.CompilerParams(
            # Batch tiles are independent -> parallel (v7x dual-TC sharding;
            # neutral on single-TC v5e/v6e).
            dimension_semantics=("parallel",),
            vmem_limit_bytes=VMEM_BUDGET,
        ),
        cost_estimate=cost,
    )(x_p, w1_p, b1, w2_p, b2_p)

    # Slice off batch/output padding (padded output columns are exactly zero).
    return out_p[:B, :d_out]


def init_params(key, input_dim, output_dim):
    """Deterministic init mimicking PyTorch nn.Linear default U(-1/sqrt(fan_in), 1/sqrt(fan_in))."""
    k1, k2, k3, k4 = jax.random.split(key, 4)
    bound1 = 1.0 / jnp.sqrt(jnp.float32(input_dim))
    bound2 = 1.0 / jnp.sqrt(jnp.float32(HIDDEN))
    w1 = jax.random.uniform(k1, (input_dim, HIDDEN), jnp.float32, -bound1, bound1)
    b1 = jax.random.uniform(k2, (1, HIDDEN), jnp.float32, -bound1, bound1)
    w2 = jax.random.uniform(k3, (HIDDEN, output_dim), jnp.float32, -bound2, bound2)
    b2 = jax.random.uniform(k4, (1, output_dim), jnp.float32, -bound2, bound2)
    return w1, b1, w2, b2


if __name__ == "__main__":
    key = jax.random.PRNGKey(0)
    batch, input_dim, output_dim = 8, 32, 64

    k_x, k_p = jax.random.split(key)
    client_info = jax.random.normal(k_x, (batch, input_dim), jnp.float32)
    w1, b1, w2, b2 = init_params(k_p, input_dim, output_dim)

    out = generic_vector_generator(client_info, w1, b1, w2, b2)
    out = jax.block_until_ready(out)

    # Reference check in plain JAX (same math as the PyTorch module).
    ref = jnp.maximum(client_info @ w1 + b1, 0.0) @ w2 + b2
    assert out.shape == (batch, output_dim)
    assert jnp.allclose(out, ref, atol=1e-5, rtol=1e-5)

    print("KERNEL_OK")
</pallas_src>

<mosaic_0001>
module attributes {stable_mosaic.version = 11 : i64} {
  func.func @_mlp_kernel(%arg0: i32, %arg1: memref<8x128xf32, #tpu.memory_space<vmem>>, %arg2: memref<128x256xf32, #tpu.memory_space<vmem>>, %arg3: memref<1x256xf32, #tpu.memory_space<vmem>>, %arg4: memref<256x128xf32, #tpu.memory_space<vmem>>, %arg5: memref<1x128xf32, #tpu.memory_space<vmem>>, %arg6: memref<8x128xf32, #tpu.memory_space<vmem>>) attributes {dimension_semantics = [#tpu.dimension_semantics<parallel>], iteration_bounds = array<i64: 1>, scalar_prefetch = 0 : i64, scratch_operands = 0 : i64, tpu.core_type = #tpu.core_type<tc>, window_params = [{transform_indices = @transform_0, window_bounds = array<i64: 8, 128>}, {pipeline_mode = #tpu.pipeline_mode<synchronous>, transform_indices = @transform_1, window_bounds = array<i64: 128, 256>}, {pipeline_mode = #tpu.pipeline_mode<synchronous>, transform_indices = @transform_2, window_bounds = array<i64: 1, 256>}, {pipeline_mode = #tpu.pipeline_mode<synchronous>, transform_indices = @transform_3, window_bounds = array<i64: 256, 128>}, {pipeline_mode = #tpu.pipeline_mode<synchronous>, transform_indices = @transform_4, window_bounds = array<i64: 1, 128>}, {transform_indices = @transform_5, window_bounds = array<i64: 8, 128>}]} {
    %c0 = arith.constant 0 : index
    %c0_0 = arith.constant 0 : index
    %0 = vector.load %arg1[%c0, %c0_0] : memref<8x128xf32, #tpu.memory_space<vmem>>, vector<8x128xf32>
    %c0_1 = arith.constant 0 : index
    %c0_2 = arith.constant 0 : index
    %1 = vector.load %arg2[%c0_1, %c0_2] : memref<128x256xf32, #tpu.memory_space<vmem>>, vector<128x256xf32>
    %cst = arith.constant dense<0.000000e+00> : vector<8x256xf32>
    %2 = tpu.matmul %0, %1, %cst {dimension_numbers = #tpu.dot_dimension_numbers<[1], [0], [0], [1], [0, 0, 1, 1], [], []>} : vector<8x128xf32>, vector<128x256xf32>, vector<8x256xf32> -> vector<8x256xf32>
    %c0_3 = arith.constant 0 : index
    %c0_4 = arith.constant 0 : index
    %3 = vector.load %arg3[%c0_3, %c0_4] : memref<1x256xf32, #tpu.memory_space<vmem>>, vector<1x256xf32>
    %4 = vector.broadcast %3 : vector<1x256xf32> to vector<8x256xf32>
    %5 = arith.addf %2, %4 : vector<8x256xf32>
    %cst_5 = arith.constant 0.000000e+00 : f32
    %6 = vector.broadcast %cst_5 : f32 to vector<8x256xf32>
    %7 = arith.maximumf %5, %6 : vector<8x256xf32>
    %c0_6 = arith.constant 0 : index
    %c0_7 = arith.constant 0 : index
    %8 = vector.load %arg4[%c0_6, %c0_7] : memref<256x128xf32, #tpu.memory_space<vmem>>, vector<256x128xf32>
    %cst_8 = arith.constant dense<0.000000e+00> : vector<8x128xf32>
    %9 = tpu.matmul %7, %8, %cst_8 {dimension_numbers = #tpu.dot_dimension_numbers<[1], [0], [0], [1], [0, 0, 1, 1], [], []>} : vector<8x256xf32>, vector<256x128xf32>, vector<8x128xf32> -> vector<8x128xf32>
    %c0_9 = arith.constant 0 : index
    %c0_10 = arith.constant 0 : index
    %10 = vector.load %arg5[%c0_9, %c0_10] : memref<1x128xf32, #tpu.memory_space<vmem>>, vector<1x128xf32>
    %11 = vector.broadcast %10 : vector<1x128xf32> to vector<8x128xf32>
    %12 = arith.addf %9, %11 : vector<8x128xf32>
    %c0_11 = arith.constant 0 : index
    %c0_12 = arith.constant 0 : index
    %13 = vector.load %arg6[%c0_11, %c0_12] : memref<8x128xf32, #tpu.memory_space<vmem>>, vector<8x128xf32>
    tpu.vector_store %arg6[%c0_11, %c0_12], %12 {strides = array<i32>} : memref<8x128xf32, #tpu.memory_space<vmem>>, vector<8x128xf32>,
    return
  }
  func.func @transform_0(%arg0: i32) -> (i32, i32) {
    %c0_i32 = arith.constant 0 : i32
    %c0_i32_0 = arith.constant 0 : i32
    return %arg0, %c0_i32 : i32, i32
  }
  func.func @transform_1(%arg0: i32) -> (i32, i32) {
    %c0_i32 = arith.constant 0 : i32
    %c0_i32_0 = arith.constant 0 : i32
    %c0_i32_1 = arith.constant 0 : i32
    return %c0_i32, %c0_i32_0 : i32, i32
  }
  func.func @transform_2(%arg0: i32) -> (i32, i32) {
    %c0_i32 = arith.constant 0 : i32
    %c0_i32_0 = arith.constant 0 : i32
    %c0_i32_1 = arith.constant 0 : i32
    return %c0_i32, %c0_i32_0 : i32, i32
  }
  func.func @transform_3(%arg0: i32) -> (i32, i32) {
    %c0_i32 = arith.constant 0 : i32
    %c0_i32_0 = arith.constant 0 : i32
    %c0_i32_1 = arith.constant 0 : i32
    return %c0_i32, %c0_i32_0 : i32, i32
  }
  func.func @transform_4(%arg0: i32) -> (i32, i32) {
    %c0_i32 = arith.constant 0 : i32
    %c0_i32_0 = arith.constant 0 : i32
    %c0_i32_1 = arith.constant 0 : i32
    return %c0_i32, %c0_i32_0 : i32, i32
  }
  func.func @transform_5(%arg0: i32) -> (i32, i32) {
    %c0_i32 = arith.constant 0 : i32
    %c0_i32_0 = arith.constant 0 : i32
    return %arg0, %c0_i32 : i32, i32
  }
}

</mosaic_0001>

<bundles_post_ra>
// kernel: generic_vector_generator.1
= control target key start
LH: loop header
LB: loop body
LE: loop exit
PB: predicated region body
PF: predicated region fallthrough
CT: control target
= control target key end

     0   :  { %v323_v4 = vmov 0.0   ;;  %s559_s0 = inlined_call_operand.vmem [shape: f32[8,128], index: 0, kind: input, shape index: {}]   ;;  %s560_s1 = inlined_call_operand.vmem [shape: f32[128,256], index: 1, kind: input, shape index: {}]   ;;  %s561_s2 = inlined_call_operand.vmem [shape: f32[1,256], index: 2, kind: input, shape index: {}]   ;;  %s562_s3 = inlined_call_operand.vmem [shape: f32[256,128], index: 3, kind: input, shape index: {}]   ;;  %s563_s4 = inlined_call_operand.vmem [shape: f32[1,128], index: 4, kind: input, shape index: {}]   ;;  %s564_s5 = inlined_call_operand.hbm [shape: f32[8,128], index: 5, kind: output, shape index: {}]  }
   0x1   :  { %v53_v0 = vld [vmem:[%s560_s1 + $0xf8] sm:$0xff]  ;;  %v52_v1 = vld [vmem:[%s560_s1 + $0xf0] sm:$0xff]  ;;  %v51_v2 = vld [vmem:[%s560_s1 + $0xe8] sm:$0xff]  ;;  %130 = vmatprep.mubr.f32.mxu0 %v323_v4 }
   0x2   :  { %66 = vmatprep.subr.mxu0 %v53_v0  ;;  %v50_v3 = vld [vmem:[%s560_s1 + $0xe0] sm:$0xff]  ;;  %v49_v5 = vld [vmem:[%s560_s1 + $0xd8] sm:$0xff]  ;;  %v48_v6 = vld [vmem:[%s560_s1 + $0xd0] sm:$0xff] }
   0x3   :  { %67 = vmatpush1.msra.mxu0 %v52_v1  ;;  %v47_v7 = vld [vmem:[%s560_s1 + $0xc8] sm:$0xff]  ;;  %v46_v8 = vld [vmem:[%s560_s1 + $0xc0] sm:$0xff]  ;;  %v45_v9 = vld [vmem:[%s560_s1 + $0xb8] sm:$0xff] }
   0x4   :  { %68 = vmatprep.subr.mxu0 %v51_v2  ;;  %v44_v10 = vld [vmem:[%s560_s1 + $0xb0] sm:$0xff]  ;;  %v43_v11 = vld [vmem:[%s560_s1 + $0xa8] sm:$0xff]  ;;  %v42_v12 = vld [vmem:[%s560_s1 + $0xa0] sm:$0xff] }
   0x5   :  { %69 = vmatpush1.msra.mxu0 %v50_v3  ;;  %v41_v13 = vld [vmem:[%s560_s1 + $0x98] sm:$0xff]  ;;  %v40_v14 = vld [vmem:[%s560_s1 + $0x90] sm:$0xff]  ;;  %v39_v18 = vld [vmem:[%s560_s1 + $0x88] sm:$0xff] }
   0x6   :  { %70 = vmatprep.subr.mxu0 %v49_v5  ;;  %v170_v15 = vld [vmem:[%s562_s3 + $0xf8] sm:$0xff]  ;;  %v169_v17 = vld [vmem:[%s562_s3 + $0xf0] sm:$0xff]  ;;  %v38_v20 = vld [vmem:[%s560_s1 + $0x80] sm:$0xff] }
   0x7   :  { %71 = vmatpush1.msra.mxu0 %v48_v6  ;;  %v154_v16 = vld [vmem:[%s562_s3 + $0x78] sm:$0xff]  ;;  %264 = vmatprep.subr.mxu1 %v170_v15  ;;  %v153_v19 = vld [vmem:[%s562_s3 + $0x70] sm:$0xff]  ;;  %v168_v21 = vld [vmem:[%s562_s3 + $0xe8] sm:$0xff] }
   0x8   :  { %72 = vmatprep.subr.mxu0 %v47_v7  ;;  %265 = vmatpush3.msra.mxu1 %v154_v16  ;;  %v37_v22 = vld [vmem:[%s560_s1 + $0x78] sm:$0xff]  ;;  %v152_v23 = vld [vmem:[%s562_s3 + $0x68] sm:$0xff]  ;;  %v36_v24 = vld [vmem:[%s560_s1 + $0x70] sm:$0xff] }
   0x9   :  { %73 = vmatpush1.msra.mxu0 %v46_v8  ;;  %266 = vmatprep.subr.mxu1 %v169_v17  ;;  %v167_v25 = vld [vmem:[%s562_s3 + $0xe0] sm:$0xff]  ;;  %v35_v26 = vld [vmem:[%s560_s1 + $0x68] sm:$0xff]  ;;  %v166_v29 = vld [vmem:[%s562_s3 + $0xd8] sm:$0xff] }
   0xa   :  { %74 = vmatprep.subr.mxu0 %v45_v9  ;;  %267 = vmatpush3.msra.mxu1 %v153_v19  ;;  %v151_v27 = vld [vmem:[%s562_s3 + $0x60] sm:$0xff]  ;;  %v33_v30 = vld [vmem:[%s560_s1 + $0x58] sm:$0xff]  ;;  %v32_v32 = vld [vmem:[%s560_s1 + $0x50] sm:$0xff] }
   0xb   :  { %75 = vmatpush1.msra.mxu0 %v44_v10  ;;  %268 = vmatprep.subr.mxu1 %v168_v21  ;;  %v34_v28 = vld [vmem:[%s560_s1 + $0x60] sm:$0xff]  ;;  %v150_v31 = vld [vmem:[%s562_s3 + $0x58] sm:$0xff]  ;;  %v165_v33 = vld [vmem:[%s562_s3 + $0xd0] sm:$0xff] }
   0xc   :  { %76 = vmatprep.subr.mxu0 %v43_v11  ;;  %269 = vmatpush3.msra.mxu1 %v152_v23 }
   0xd   :  { %77 = vmatpush1.msra.mxu0 %v42_v12  ;;  %270 = vmatprep.subr.mxu1 %v167_v25 }
   0xe   :  { %78 = vmatprep.subr.mxu0 %v41_v13  ;;  %271 = vmatpush3.msra.mxu1 %v151_v27 }
   0xf   :  { %79 = vmatpush1.msra.mxu0 %v40_v14 }
  0x10   :  { %80 = vmatprep.subr.mxu0 %v39_v18 }
  0x11   :  { %81 = vmatpush1.msra.mxu0 %v38_v20 }
  0x12   :  { %82 = vmatprep.subr.mxu0 %v37_v22 }
  0x13   :  { %83 = vmatpush1.msra.mxu0 %v36_v24 }
  0x14   :  { %84 = vmatprep.subr.mxu0 %v35_v26 }
  0x15   :  { %10 = vsyncpa [#allocation3], 0  ;;  %85 = vmatpush1.msra.mxu0 %v34_v28  ;;  %v31_v34 = vld [vmem:[%s560_s1 + $0x48] sm:$0xff]  ;;  %272 = vmatprep.subr.mxu1 %v166_v29  ;;  %v149_v35 = vld [vmem:[%s562_s3 + $0x50] sm:$0xff]  ;;  %v56_v2 = vlaneseq  ;;  %s324_s24 = smov [#allocation2]  }
  0x16   :  { %86 = vmatprep.subr.mxu0 %v33_v30  ;;  %v30_v36 = vld [vmem:[%s560_s1 + $0x40] sm:$0xff]  ;;  %273 = vmatpush3.msra.mxu1 %v150_v31  ;;  %v164_v37 = vld [vmem:[%s562_s3 + $0xc8] sm:$0xff]  ;;  %v29_v38 = vld [vmem:[%s560_s1 + $0x38] sm:$0xff]  ;;  %s255_s25 = sshll.u32 %s324_s24, 4  ;;  %s256_s25 = int_to_ptr.vmem [resolvable:$true] %s255_s25 }
  0x17   :  { %87 = vmatpush1.msra.mxu0 %v32_v32  ;;  %274 = vmatprep.subr.mxu1 %v165_v33  ;;  %v148_v39 = vld [vmem:[%s562_s3 + $0x48] sm:$0xff]  ;;  %v28_v40 = vld [vmem:[%s560_s1 + $0x30] sm:$0xff]  ;;  %v163_v41 = vld [vmem:[%s562_s3 + $0xc0] sm:$0xff]  ;;  %v57_v3 = vshrl.u32 %v56_v2, 7  ;;  %p306_p1 = scmp.lt.s32.totalorder %s256_s25, %s256_s25 }
  0x18   :  { %88 = vmatprep.subr.mxu0 %v31_v34  ;;  %275 = vmatpush3.msra.mxu1 %v149_v35  ;;  %v27_v42 = vld [vmem:[%s560_s1 + $0x28] sm:$0xff]  ;;  %v147_v43 = vld [vmem:[%s562_s3 + $0x40] sm:$0xff]  ;;  %v162_v45 = vld [vmem:[%s562_s3 + $0xb8] sm:$0xff] }
  0x19   :  { %89 = vmatpush1.msra.mxu0 %v30_v36  ;;  %276 = vmatprep.subr.mxu1 %v164_v37  ;;  %v26_v44 = vld [vmem:[%s560_s1 + $0x20] sm:$0xff]  ;;  %v25_v46 = vld [vmem:[%s560_s1 + $0x18] sm:$0xff]  ;;  %v24_v48 = vld [vmem:[%s560_s1 + $0x10] sm:$0xff]  ;;  %v58_v4 = vsub.s32 0, %v57_v3  ;;  %v62_v6 = vsub.s32 1, %v57_v3 }
  0x1a   :  { %90 = vmatprep.subr.mxu0 %v29_v38  ;;  %277 = vmatpush3.msra.mxu1 %v148_v39  ;;  %v146_v47 = vld [vmem:[%s562_s3 + $0x38] sm:$0xff]  ;;  %v161_v49 = vld [vmem:[%s562_s3 + $0xb0] sm:$0xff]  ;;  %v23_v50 = vld [vmem:[%s560_s1 + $0x8] sm:$0xff] }
  0x1b   :  { %91 = vmatpush1.msra.mxu0 %v28_v40  ;;  %278 = vmatprep.subr.mxu1 %v163_v41  ;;  %v145_v51 = vld [vmem:[%s562_s3 + $0x30] sm:$0xff]  ;;  %v22_v52 = vld [vmem:[%s560_s1] sm:$0xff]  ;;  %v160_v53 = vld [vmem:[%s562_s3 + $0xa8] sm:$0xff] }
  0x1c   :  { %92 = vmatprep.subr.mxu0 %v27_v42  ;;  %279 = vmatpush3.msra.mxu1 %v147_v43  ;;  %v21_v54 = vld [vmem:[%s559_s0] sm:$0xff]  ;;  %v144_v55 = vld [vmem:[%s562_s3 + $0x28] sm:$0xff]  ;;  %v158_v58 = vld [vmem:[%s562_s3 + $0x98] sm:$0xff] }
  0x1d   :  { %93 = vmatpush1.msra.mxu0 %v26_v44  ;;  %280 = vmatprep.subr.mxu1 %v162_v45  ;;  %v159_v56 = vld [vmem:[%s562_s3 + $0xa0] sm:$0xff]  ;;  %v142_v59 = vld [vmem:[%s562_s3 + $0x18] sm:$0xff]  ;;  %v157_v60 = vld [vmem:[%s562_s3 + $0x90] sm:$0xff] }
  0x1e   :  { %94 = vmatprep.subr.mxu0 %v25_v46  ;;  %281 = vmatpush3.msra.mxu1 %v146_v47  ;;  %v143_v57 = vld [vmem:[%s562_s3 + $0x20] sm:$0xff]  ;;  %v141_v61 = vld [vmem:[%s562_s3 + $0x10] sm:$0xff]  ;;  %v156_v62 = vld [vmem:[%s562_s3 + $0x88] sm:$0xff] }
  0x1f   :  { %95 = vmatpush1.msra.mxu0 %v24_v48  ;;  %282 = vmatprep.subr.mxu1 %v161_v49  ;;  %v140_v63 = vld [vmem:[%s562_s3 + $0x8] sm:$0xff]  ;;  %v155_v0 = vld [vmem:[%s562_s3 + $0x80] sm:$0xff] }
  0x20   :  { %96 = vmatprep.subr.mxu0 %v23_v50  ;;  %283 = vmatpush3.msra.mxu1 %v145_v51  ;;  %v139_v1 = vld [vmem:[%s562_s3] sm:$0xff] }
  0x21   :  { %97 = vmatpush1.msra.mxu0 %v22_v52  ;;  %284 = vmatprep.subr.mxu1 %v160_v53  ;;  %v54_v5 = vld [vmem:[%s561_s2] sm:$0x3]  ;;  %s301_s2 = scalar_lea.vmem %s256_s25, 128 }
  0x22   :  { %131 = vmatmul.mubr.f32.vlgmr.msra.gmra.mxu0 %v21_v54  ;;  %285 = vmatpush3.msra.mxu1 %v144_v55  ;;  %v59_v7 = vrot.slane %v54_v5, %v58_v4  ;;  %v63_v8 = vrot.slane %v54_v5, %v62_v6  ;;  %v263_v17 = vld [vmem:[%s563_s4] ss:$0 sm:$0xff]  ;;  %p302_p0 = scmp.ne.s32.totalorder %s256_s25, %s301_s2  ;;  %p307_p2 = scmp.lt.s32.totalorder %s301_s2, %s301_s2 }
  0x23   :  { %286 = vmatprep.subr.mxu1 %v159_v56 }
  0x24   :  { %287 = vmatpush3.msra.mxu1 %v143_v57  ;;  %p308_p3 = por %p307_p2, %p306_p1 }
  0x25   :  { %288 = vmatprep.subr.mxu1 %v158_v58 }
  0x26   :  { %289 = vmatpush3.msra.mxu1 %v142_v59  ;;  %p309_p4 = pnand %p308_p3, %p302_p0 }
  0x27   :  { %290 = vmatprep.subr.mxu1 %v157_v60 }
  0x28   :  { %291 = vmatpush3.msra.mxu1 %v141_v61 }
  0x29   :  { %292 = vmatprep.subr.mxu1 %v156_v62 }
  0x2a   :  { %293 = vmatpush3.msra.mxu1 %v140_v63 }
  0x2b   :  { %294 = vmatprep.subr.mxu1 %v155_v0 }
  0x2c   :  { %295 = vmatpush3.msra.mxu1 %v139_v1 }
  0xe2   :  { %v132_v9 = vpop.f32.mrf.mxu0 }
  0xe3   :  { %v133_v10 = vadd.f32 %v132_v9, %v59_v7 }
  0xe4   :  { %v134_v11 = vpop.f32.mrf.mxu0 }
  0xe5   :  { %v135_v12 = vadd.f32 %v134_v11, %v63_v8  ;;  %v137_v14 = vmax.f32 %v133_v10, 0.0 }
  0xe7   :  { %v138_v13 = vmax.f32 %v135_v12, 0.0 }
  0xe9   :  { %242 = vmatprep.mubr.f32.mxu1 %v138_v13 }
  0xea   :  { %243 = vmatmul.mubr.f32.vlgmr.msra.gmra.mxu1 %v137_v14 }
 0x1aa   :  { %v296_v15 = vpop.f32.mrf.mxu1 }
 0x1ac   :  { %v297_v16 = vpop.f32.mrf.mxu1 }
 0x1ad   :  { %v298_v18 = vadd.f32 %v297_v16, %v296_v15 }
 0x1af   :  { %v245_v19 = vadd.f32 %v298_v18, %v263_v17 }
 0x1b1   :  { %248 = vst [vmem:[#allocation2] sm:$0xff] %v245_v19 }
 0x1b2   :  { %312 = shalt.err (!%p309_p4)
}
 0x1b3   :  { %258 = dma.vmem_to_hbm [thread:$0]  %s256_s25, 128, %s564_s5, [#allocation3]  }
 0x1b4   :  { %321 = dma.done.wait [#allocation3], 128  }
 0x1b5   :  { %322 = vsyncadd [#allocation3], 4294967168 }
 0x1b6   :  { %262 = vsyncpa [#allocation3], 1 }

</bundles_post_ra>
